<compile_context>
chip_gen: v7x
topology: tpu7x:2x2x1
jax: 0.10.0
libtpu: 0.0.40
codegen_flags: <defaults>
</compile_context>

<pallas_src>
import jax
import jax.numpy as jnp
from jax import lax
from jax.experimental import pallas as pl
from jax.experimental.pallas import tpu as pltpu

LN_EPS = 1e-5


def mean_centering_pool_kernel(x_ref, tri_ref, invd_ref, w_ref, o_ref, carry_ref):
    """One grid step: BB batch elements x TS sequence rows.

    x_ref:     (BB, TS, D)  input block
    tri_ref:   (TS, TS)     lower-triangular ones (resident across the grid)
    invd_ref:  (TS, 1)      1/(global_position+1) for this sequence chunk
    w_ref:     (D, D)       (weight * gamma).T, i.e. (in, out) layout
    o_ref:     (BB, TS, D)  output block
    carry_ref: (BB, D)      running sum of normalized rows from previous chunks
    """
    # Reset the cumsum carry at the start of every batch group's sequence loop.
    @pl.when(pl.program_id(1) == 0)
    def _():
        carry_ref[...] = jnp.zeros_like(carry_ref)

    BB = x_ref.shape[0]
    cdt = w_ref.dtype  # MXU operand dtype (bf16 for bf16 inputs, else f32)

    # ---- LayerNorm (statistics in f32). gamma/beta are folded into w_ref. ----
    xf = x_ref[...].astype(jnp.float32)                       # (BB, TS, D)
    mean = jnp.mean(xf, axis=-1, keepdims=True)
    var = jnp.mean((xf - mean) ** 2, axis=-1, keepdims=True)
    xn = (xf - mean) * lax.rsqrt(var + LN_EPS)                # (BB, TS, D), f32

    tri = tri_ref[...]                                        # (TS, TS)
    invd = invd_ref[...]                                      # (TS, 1), f32
    wt = w_ref[...]                                           # (D, D)

    # Static unroll over the (small) batch block.
    for bb in range(BB):
        xn_b = xn[bb]                                         # (TS, D), f32
        # In-chunk inclusive cumsum via lower-triangular matmul (MXU) + carry.
        csum = jnp.dot(tri, xn_b.astype(cdt),
                       preferred_element_type=jnp.float32)    # (TS, D)
        csum = csum + carry_ref[bb:bb + 1, :]                 # broadcast (1, D)
        # cummean - xn, then projection with gamma-folded, pre-transposed W.
        y = csum * invd - xn_b
        o_ref[bb] = jnp.dot(y.astype(cdt), wt,
                            preferred_element_type=jnp.float32).astype(o_ref.dtype)
        # Update the carry with this chunk's column sum.
        carry_ref[bb:bb + 1, :] = (
            carry_ref[bb:bb + 1, :] + jnp.sum(xn_b, axis=0, keepdims=True)
        )


def _pick_seq_block(S, cap=512):
    """Largest multiple-of-8 divisor of S that is <= cap (else whole S)."""
    if S <= cap:
        return S
    for t in range(min(cap, S), 7, -1):
        if S % t == 0 and t % 8 == 0:
            return t
    return S


def _pick_batch_block(B, D, cap_lanes=256):
    """Pack batch elements per step so roughly cap_lanes worth of D is processed."""
    cap = max(1, cap_lanes // max(D, 1))
    cap = max(1, min(B, cap))
    for t in range(cap, 0, -1):
        if B % t == 0:
            return t
    return 1


def _vmem_limit_bytes(BB, TS, D, x_itemsize, cdt_itemsize):
    x_tile = BB * TS * D * x_itemsize
    out_tile = BB * TS * D * x_itemsize
    tri = TS * TS * cdt_itemsize
    w = D * D * cdt_itemsize
    invd = TS * 4
    carry = BB * D * 4
    # double-buffered streaming tiles + resident blocks + headroom
    needed = 2 * (x_tile + out_tile + invd) + 2 * (tri + w) + carry
    try:
        phys = pltpu.get_tpu_info().vmem_capacity_bytes
    except Exception:
        phys = 64 * 1024 * 1024  # conservative (v7x per-TC)
    limit = max(2 * needed + (8 << 20), 32 << 20)
    return int(min(limit, int(phys * 0.75)))


def mean_centering_pool(x, gamma, beta, weight):
    """x: (B, S, D); gamma, beta: (D,); weight: (D, D) in nn.Linear (out, in) layout."""
    B, S, D = x.shape

    # MXU operand dtype: bf16 only if the model runs in bf16 (exact-enough);
    # f32 inputs keep f32 operands to preserve accuracy.
    compute_dtype = jnp.bfloat16 if x.dtype == jnp.bfloat16 else jnp.float32

    # Fold gamma into the projection weight and pre-transpose to (in, out).
    # beta cancels exactly: cummean(z*g + b) - (z*g + b) = (cummean(z) - z) * g.
    wt_eff = (weight * gamma[None, :]).T.astype(compute_dtype)        # (D_in, D_out)

    TS = _pick_seq_block(S)
    BB = _pick_batch_block(B, D)

    # Precomputed, grid-resident lower-triangular ones matrix (cumsum via MXU)
    # and exact reciprocal denominators 1/(t+1) for each sequence position.
    tri = jnp.tril(jnp.ones((TS, TS), dtype=compute_dtype))
    inv_denom = (1.0 / (jnp.arange(S, dtype=jnp.float32) + 1.0)).reshape(S, 1)

    vmem_limit = _vmem_limit_bytes(
        BB, TS, D, jnp.dtype(x.dtype).itemsize, jnp.dtype(compute_dtype).itemsize
    )

    grid = (B // BB, S // TS)

    return pl.pallas_call(
        mean_centering_pool_kernel,
        out_shape=jax.ShapeDtypeStruct((B, S, D), x.dtype),
        grid_spec=pltpu.PrefetchScalarGridSpec(
            num_scalar_prefetch=0,
            grid=grid,
            in_specs=[
                pl.BlockSpec((BB, TS, D), lambda b, s: (b, s, 0)),   # x chunk
                pl.BlockSpec((TS, TS), lambda b, s: (0, 0)),         # tri (resident)
                pl.BlockSpec((TS, 1), lambda b, s: (s, 0)),          # 1/(t+1) chunk
                pl.BlockSpec((D, D), lambda b, s: (0, 0)),           # folded W^T (resident)
            ],
            out_specs=pl.BlockSpec((BB, TS, D), lambda b, s: (b, s, 0)),
            scratch_shapes=[pltpu.VMEM((BB, D), jnp.float32)],        # cumsum carry
        ),
        compiler_params=pltpu.CompilerParams(
            dimension_semantics=("parallel", "arbitrary"),
            vmem_limit_bytes=vmem_limit,
        ),
    )(x, tri, inv_denom, wt_eff)


def mean_centering_pool_ref(x, gamma, beta, weight):
    xf = x.astype(jnp.float32)
    mean = jnp.mean(xf, axis=-1, keepdims=True)
    var = jnp.mean((xf - mean) ** 2, axis=-1, keepdims=True)
    xn = (xf - mean) / jnp.sqrt(var + LN_EPS) * gamma + beta
    S = x.shape[1]
    denom = (jnp.arange(S, dtype=jnp.float32) + 1.0)[None, :, None]
    cmean = jnp.cumsum(xn, axis=1) / denom
    y = cmean - xn
    return (y @ weight.T).astype(x.dtype)


if __name__ == "__main__":
    key = jax.random.PRNGKey(0)
    k_x, k_g, k_b, k_w = jax.random.split(key, 4)

    B, S, D = 2, 8, 32
    x = jax.random.normal(k_x, (B, S, D), dtype=jnp.float32)

    # Deterministic parameter init (shapes match nn.LayerNorm(D) / nn.Linear(D, D, bias=False))
    gamma = 1.0 + 0.1 * jax.random.normal(k_g, (D,), dtype=jnp.float32)
    beta = 0.1 * jax.random.normal(k_b, (D,), dtype=jnp.float32)
    weight = jax.random.normal(k_w, (D, D), dtype=jnp.float32) * (1.0 / jnp.sqrt(D))

    out = mean_centering_pool(x, gamma, beta, weight)
    out = jax.block_until_ready(out)

    ref = mean_centering_pool_ref(x, gamma, beta, weight)
    assert out.shape == (B, S, D)
    assert jnp.allclose(out, ref, atol=1e-4, rtol=1e-4), "mismatch vs reference"

    print("KERNEL_OK")
</pallas_src>

<mosaic_0001>
module attributes {stable_mosaic.version = 11 : i64} {
  func.func @mean_centering_pool_kernel(%arg0: i32, %arg1: i32, %arg2: memref<2x8x32xf32, #tpu.memory_space<vmem>>, %arg3: memref<8x8xf32, #tpu.memory_space<vmem>>, %arg4: memref<8x1xf32, #tpu.memory_space<vmem>>, %arg5: memref<32x32xf32, #tpu.memory_space<vmem>>, %arg6: memref<2x8x32xf32, #tpu.memory_space<vmem>>, %arg7: memref<2x32xf32, #tpu.memory_space<vmem>>) attributes {dimension_semantics = [#tpu.dimension_semantics<parallel>, #tpu.dimension_semantics<arbitrary>], iteration_bounds = array<i64: 1, 1>, scalar_prefetch = 0 : i64, scratch_operands = 1 : i64, tpu.core_type = #tpu.core_type<tc>, window_params = [{transform_indices = @transform_0, window_bounds = array<i64: 2, 8, 32>}, {pipeline_mode = #tpu.pipeline_mode<synchronous>, transform_indices = @transform_1, window_bounds = array<i64: 8, 8>}, {transform_indices = @transform_2, window_bounds = array<i64: 8, 1>}, {pipeline_mode = #tpu.pipeline_mode<synchronous>, transform_indices = @transform_3, window_bounds = array<i64: 32, 32>}, {transform_indices = @transform_4, window_bounds = array<i64: 2, 8, 32>}]} {
    %c0_i32 = arith.constant 0 : i32
    %0 = arith.cmpi eq, %arg1, %c0_i32 : i32
    %1 = arith.extui %0 : i1 to i32
    %c0_i32_0 = arith.constant 0 : i32
    %2 = arith.cmpi ne, %1, %c0_i32_0 : i32
    scf.if %2 {
      %cst_36 = arith.constant 0.000000e+00 : f32
      %61 = vector.broadcast %cst_36 : f32 to vector<2x32xf32>
      %c0_37 = arith.constant 0 : index
      %c0_38 = arith.constant 0 : index
      %62 = vector.load %arg7[%c0_37, %c0_38] : memref<2x32xf32, #tpu.memory_space<vmem>>, vector<2x32xf32>
      tpu.vector_store %arg7[%c0_37, %c0_38], %61 {strides = array<i32>} : memref<2x32xf32, #tpu.memory_space<vmem>>, vector<2x32xf32>,
    } else {
    }
    %c0 = arith.constant 0 : index
    %c0_1 = arith.constant 0 : index
    %c0_2 = arith.constant 0 : index
    %3 = vector.load %arg2[%c0, %c0_1, %c0_2] : memref<2x8x32xf32, #tpu.memory_space<vmem>>, vector<2x8x32xf32>
    %cst = arith.constant dense<0.000000e+00> : vector<2x8xf32>
    %4 = vector.multi_reduction <add>, %3, %cst [2] : vector<2x8x32xf32> to vector<2x8xf32>
    %5 = vector.shape_cast %4 : vector<2x8xf32> to vector<2x8x1xf32>
    %cst_3 = arith.constant 3.200000e+01 : f32
    %6 = vector.broadcast %cst_3 : f32 to vector<2x8x1xf32>
    %7 = arith.divf %5, %6 : vector<2x8x1xf32>
    %8 = vector.broadcast %7 : vector<2x8x1xf32> to vector<2x8x32xf32>
    %9 = arith.subf %3, %8 : vector<2x8x32xf32>
    %10 = arith.mulf %9, %9 : vector<2x8x32xf32>
    %cst_4 = arith.constant dense<0.000000e+00> : vector<2x8xf32>
    %11 = vector.multi_reduction <add>, %10, %cst_4 [2] : vector<2x8x32xf32> to vector<2x8xf32>
    %12 = vector.shape_cast %11 : vector<2x8xf32> to vector<2x8x1xf32>
    %cst_5 = arith.constant 3.200000e+01 : f32
    %13 = vector.broadcast %cst_5 : f32 to vector<2x8x1xf32>
    %14 = arith.divf %12, %13 : vector<2x8x1xf32>
    %15 = vector.broadcast %7 : vector<2x8x1xf32> to vector<2x8x32xf32>
    %16 = arith.subf %3, %15 : vector<2x8x32xf32>
    %cst_6 = arith.constant 9.99999974E-6 : f32
    %17 = vector.broadcast %cst_6 : f32 to vector<2x8x1xf32>
    %18 = arith.addf %14, %17 : vector<2x8x1xf32>
    %19 = math.rsqrt %18 : vector<2x8x1xf32>
    %20 = vector.broadcast %19 : vector<2x8x1xf32> to vector<2x8x32xf32>
    %21 = arith.mulf %16, %20 : vector<2x8x32xf32>
    %c0_7 = arith.constant 0 : index
    %c0_8 = arith.constant 0 : index
    %22 = vector.load %arg3[%c0_7, %c0_8] : memref<8x8xf32, #tpu.memory_space<vmem>>, vector<8x8xf32>
    %c0_9 = arith.constant 0 : index
    %c0_10 = arith.constant 0 : index
    %23 = vector.load %arg4[%c0_9, %c0_10] : memref<8x1xf32, #tpu.memory_space<vmem>>, vector<8x1xf32>
    %c0_11 = arith.constant 0 : index
    %c0_12 = arith.constant 0 : index
    %24 = vector.load %arg5[%c0_11, %c0_12] : memref<32x32xf32, #tpu.memory_space<vmem>>, vector<32x32xf32>
    %25 = vector.extract_strided_slice %21 {offsets = [0, 0, 0], sizes = [1, 8, 32], strides = [1, 1, 1]} : vector<2x8x32xf32> to vector<1x8x32xf32>
    %26 = vector.shape_cast %25 : vector<1x8x32xf32> to vector<8x32xf32>
    %cst_13 = arith.constant dense<0.000000e+00> : vector<8x32xf32>
    %27 = tpu.matmul %22, %26, %cst_13 {dimension_numbers = #tpu.dot_dimension_numbers<[1], [0], [0], [1], [0, 0, 1, 1], [], []>} : vector<8x8xf32>, vector<8x32xf32>, vector<8x32xf32> -> vector<8x32xf32>
    %c0_14 = arith.constant 0 : index
    %c0_15 = arith.constant 0 : index
    %28 = vector.load %arg7[%c0_14, %c0_15] : memref<2x32xf32, #tpu.memory_space<vmem>>, vector<1x32xf32>
    %29 = vector.broadcast %28 : vector<1x32xf32> to vector<8x32xf32>
    %30 = arith.addf %27, %29 : vector<8x32xf32>
    %31 = vector.broadcast %23 : vector<8x1xf32> to vector<8x32xf32>
    %32 = arith.mulf %30, %31 : vector<8x32xf32>
    %33 = arith.subf %32, %26 : vector<8x32xf32>
    %cst_16 = arith.constant dense<0.000000e+00> : vector<8x32xf32>
    %34 = tpu.matmul %33, %24, %cst_16 {dimension_numbers = #tpu.dot_dimension_numbers<[1], [0], [0], [1], [0, 0, 1, 1], [], []>} : vector<8x32xf32>, vector<32x32xf32>, vector<8x32xf32> -> vector<8x32xf32>
    %c0_17 = arith.constant 0 : index
    %c0_18 = arith.constant 0 : index
    %c0_19 = arith.constant 0 : index
    %35 = vector.load %arg6[%c0_17, %c0_18, %c0_19] : memref<2x8x32xf32, #tpu.memory_space<vmem>>, vector<1x8x32xf32>
    %36 = vector.shape_cast %35 : vector<1x8x32xf32> to vector<8x32xf32>
    %37 = vector.shape_cast %34 : vector<8x32xf32> to vector<1x8x32xf32>
    tpu.vector_store %arg6[%c0_17, %c0_18, %c0_19], %37 {strides = array<i32>} : memref<2x8x32xf32, #tpu.memory_space<vmem>>, vector<1x8x32xf32>,
    %c0_20 = arith.constant 0 : index
    %c0_21 = arith.constant 0 : index
    %38 = vector.load %arg7[%c0_20, %c0_21] : memref<2x32xf32, #tpu.memory_space<vmem>>, vector<1x32xf32>
    %cst_22 = arith.constant dense<0.000000e+00> : vector<32xf32>
    %39 = vector.multi_reduction <add>, %26, %cst_22 [0] : vector<8x32xf32> to vector<32xf32>
    %40 = vector.shape_cast %39 : vector<32xf32> to vector<1x32xf32>
    %41 = arith.addf %38, %40 : vector<1x32xf32>
    %c0_23 = arith.constant 0 : index
    %c0_24 = arith.constant 0 : index
    %42 = vector.load %arg7[%c0_23, %c0_24] : memref<2x32xf32, #tpu.memory_space<vmem>>, vector<1x32xf32>
    tpu.vector_store %arg7[%c0_23, %c0_24], %41 {strides = array<i32>} : memref<2x32xf32, #tpu.memory_space<vmem>>, vector<1x32xf32>,
    %43 = vector.extract_strided_slice %21 {offsets = [1, 0, 0], sizes = [1, 8, 32], strides = [1, 1, 1]} : vector<2x8x32xf32> to vector<1x8x32xf32>
    %44 = vector.shape_cast %43 : vector<1x8x32xf32> to vector<8x32xf32>
    %cst_25 = arith.constant dense<0.000000e+00> : vector<8x32xf32>
    %45 = tpu.matmul %22, %44, %cst_25 {dimension_numbers = #tpu.dot_dimension_numbers<[1], [0], [0], [1], [0, 0, 1, 1], [], []>} : vector<8x8xf32>, vector<8x32xf32>, vector<8x32xf32> -> vector<8x32xf32>
    %c1 = arith.constant 1 : index
    %c0_26 = arith.constant 0 : index
    %46 = vector.load %arg7[%c1, %c0_26] : memref<2x32xf32, #tpu.memory_space<vmem>>, vector<1x32xf32>
    %47 = vector.broadcast %46 : vector<1x32xf32> to vector<8x32xf32>
    %48 = arith.addf %45, %47 : vector<8x32xf32>
    %49 = vector.broadcast %23 : vector<8x1xf32> to vector<8x32xf32>
    %50 = arith.mulf %48, %49 : vector<8x32xf32>
    %51 = arith.subf %50, %44 : vector<8x32xf32>
    %cst_27 = arith.constant dense<0.000000e+00> : vector<8x32xf32>
    %52 = tpu.matmul %51, %24, %cst_27 {dimension_numbers = #tpu.dot_dimension_numbers<[1], [0], [0], [1], [0, 0, 1, 1], [], []>} : vector<8x32xf32>, vector<32x32xf32>, vector<8x32xf32> -> vector<8x32xf32>
    %c1_28 = arith.constant 1 : index
    %c0_29 = arith.constant 0 : index
    %c0_30 = arith.constant 0 : index
    %53 = vector.load %arg6[%c1_28, %c0_29, %c0_30] : memref<2x8x32xf32, #tpu.memory_space<vmem>>, vector<1x8x32xf32>
    %54 = vector.shape_cast %53 : vector<1x8x32xf32> to vector<8x32xf32>
    %55 = vector.shape_cast %52 : vector<8x32xf32> to vector<1x8x32xf32>
    tpu.vector_store %arg6[%c1_28, %c0_29, %c0_30], %55 {strides = array<i32>} : memref<2x8x32xf32, #tpu.memory_space<vmem>>, vector<1x8x32xf32>,
    %c1_31 = arith.constant 1 : index
    %c0_32 = arith.constant 0 : index
    %56 = vector.load %arg7[%c1_31, %c0_32] : memref<2x32xf32, #tpu.memory_space<vmem>>, vector<1x32xf32>
    %cst_33 = arith.constant dense<0.000000e+00> : vector<32xf32>
    %57 = vector.multi_reduction <add>, %44, %cst_33 [0] : vector<8x32xf32> to vector<32xf32>
    %58 = vector.shape_cast %57 : vector<32xf32> to vector<1x32xf32>
    %59 = arith.addf %56, %58 : vector<1x32xf32>
    %c1_34 = arith.constant 1 : index
    %c0_35 = arith.constant 0 : index
    %60 = vector.load %arg7[%c1_34, %c0_35] : memref<2x32xf32, #tpu.memory_space<vmem>>, vector<1x32xf32>
    tpu.vector_store %arg7[%c1_34, %c0_35], %59 {strides = array<i32>} : memref<2x32xf32, #tpu.memory_space<vmem>>, vector<1x32xf32>,
    return
  }
  func.func @transform_0(%arg0: i32, %arg1: i32) -> (i32, i32, i32) {
    %c0_i32 = arith.constant 0 : i32
    %c0_i32_0 = arith.constant 0 : i32
    return %arg0, %arg1, %c0_i32 : i32, i32, i32
  }
  func.func @transform_1(%arg0: i32, %arg1: i32) -> (i32, i32) {
    %c0_i32 = arith.constant 0 : i32
    %c0_i32_0 = arith.constant 0 : i32
    %c0_i32_1 = arith.constant 0 : i32
    return %c0_i32, %c0_i32_0 : i32, i32
  }
  func.func @transform_2(%arg0: i32, %arg1: i32) -> (i32, i32) {
    %c0_i32 = arith.constant 0 : i32
    %c0_i32_0 = arith.constant 0 : i32
    return %arg1, %c0_i32 : i32, i32
  }
  func.func @transform_3(%arg0: i32, %arg1: i32) -> (i32, i32) {
    %c0_i32 = arith.constant 0 : i32
    %c0_i32_0 = arith.constant 0 : i32
    %c0_i32_1 = arith.constant 0 : i32
    return %c0_i32, %c0_i32_0 : i32, i32
  }
  func.func @transform_4(%arg0: i32, %arg1: i32) -> (i32, i32, i32) {
    %c0_i32 = arith.constant 0 : i32
    %c0_i32_0 = arith.constant 0 : i32
    return %arg0, %arg1, %c0_i32 : i32, i32, i32
  }
}

</mosaic_0001>

<bundles_post_ra>
// kernel: tpu_custom_call.1
= control target key start
LH: loop header
LB: loop body
LE: loop exit
PB: predicated region body
PF: predicated region fallthrough
CT: control target
= control target key end

     0   :  { %9 = vsyncpa [#allocation4], 0  ;;  %s688_s0 = inlined_call_operand.hbm [shape: f32[2,8,32], index: 0, kind: input, shape index: {}]   ;;  %s689_s1 = inlined_call_operand.vmem [shape: f32[8,8], index: 1, kind: input, shape index: {}]   ;;  %s690_s2 = inlined_call_operand.vmem [shape: f32[8,1], index: 2, kind: input, shape index: {}]   ;;  %s691_s3 = inlined_call_operand.hbm [shape: f32[32,32], index: 3, kind: input, shape index: {}]   ;;  %s692_s4 = inlined_call_operand.hbm [shape: f32[2,8,32], index: 4, kind: output, shape index: {}]  }
   0x1   :  { %10 = vsyncpa [#allocation7], 0 }
   0x2   :  { %11 = vsyncpa [#allocation5], 0  ;;  %s589_s15 = smov [#allocation3]   ;;  %s517_s19 = scalar_lea.hbm %s688_s0, 256 }
   0x3   :  { %s17_s16 = sshll.u32 %s589_s15, 4  ;;  %p518_p0 = scmp.ne.s32.totalorder %s688_s0, %s517_s19  ;;  %s18_s16 = int_to_ptr.vmem [resolvable:$true] %s17_s16 }
   0x4   :  { %p521_p1 = scmp.lt.u32.totalorder %s517_s19, %s688_s0 }
   0x6   :  { %p523_p2 = pnand %p521_p1, %p518_p0 }
   0x8   :  { %526 = shalt.err (!%p523_p2)
}
   0x9   :  { %s527_s24 = scalar_lea.vmem %s18_s16, 256  ;;  %p532_p4 = scmp.lt.s32.totalorder %s18_s16, %s18_s16 }
   0xa   :  { %p528_p3 = scmp.ne.s32.totalorder %s18_s16, %s527_s24  ;;  %p533_p5 = scmp.lt.s32.totalorder %s527_s24, %s527_s24 }
   0xc   :  { %p534_p6 = por %p533_p5, %p532_p4 }
   0xe   :  { %p535_p7 = pnand %p534_p6, %p528_p3 }
  0x10   :  { %538 = shalt.err (!%p535_p7)
}
  0x11   :  { %s590_s25 = smov 128   ;;  %s591_s26 = smov 8  }
  0x12   :  { %23 = dma.hbm_to_vmem [thread:$0]  %s688_s0, 256, %s18_s16, [#allocation4], %s590_s25, %s590_s25, %s591_s26  }
  0x13   :  { %s592_s29 = smov [#allocation6]   ;;  %s539_s7 = scalar_lea.hbm %s691_s3, 512 }
  0x14   :  { %s33_s30 = sshll.u32 %s592_s29, 4  ;;  %p540_p8 = scmp.ne.s32.totalorder %s691_s3, %s539_s7  ;;  %s34_s30 = int_to_ptr.vmem [resolvable:$true] %s33_s30 }
  0x15   :  { %p543_p9 = scmp.lt.u32.totalorder %s539_s7, %s691_s3 }
  0x17   :  { %p545_p10 = pnand %p543_p9, %p540_p8 }
  0x19   :  { %548 = shalt.err (!%p545_p10)
}
  0x1a   :  { %s549_s12 = scalar_lea.vmem %s34_s30, 512  ;;  %p554_p12 = scmp.lt.s32.totalorder %s34_s30, %s34_s30 }
  0x1b   :  { %p550_p11 = scmp.ne.s32.totalorder %s34_s30, %s549_s12  ;;  %p555_p13 = scmp.lt.s32.totalorder %s549_s12, %s549_s12 }
  0x1d   :  { %p556_p0 = por %p555_p13, %p554_p12 }
  0x1f   :  { %p557_p1 = pnand %p556_p0, %p550_p11 }
  0x21   :  { %560 = shalt.err (!%p557_p1)
}
  0x22   :  { %39 = dma.hbm_to_vmem [thread:$0]  %s691_s3, 512, %s34_s30, [#allocation7], %s590_s25, %s590_s25, %s591_s26  }
  0x23   :  { %583 = dma.done.wait [#allocation4], 256  }
  0x24   :  { %584 = vsyncadd [#allocation4], 4294967040 }
  0x25   :  { %585 = dma.done.wait [#allocation7], 512  }
  0x26   :  { %586 = vsyncadd [#allocation7], 4294966784  ;;  %vm54_vm0 = vcmask 261120   ;;  %v52_v0 = vld [vmem:[#allocation3] sm:$0xff]  ;;  %v53_v1 = vld [vmem:[#allocation3 + $0x8] sm:$0xff]  ;;  %vm50_vm1 = vcmask 254976  }
  0x27   :  { %v55_v2 = vsel %vm54_vm0, %v52_v0, 0.0  ;;  %v58_v3 = vsel %vm54_vm0, %v53_v1, 0.0  ;;  %v593_v14 = vmov 0.0   ;;  %vm594_vm2 = vmmov 0   ;;  %v83_v15 = vld [vmem:[%s690_s2] sm:$0xff]  ;;  %v84_v49 = vld [vmem:[#allocation6] sm:$0xff] }
  0x28   :  { %56 = vadd.xlane.f32.xlu0 %v55_v2  ;;  %51 = vst.msk [vmem:[#allocation2] sm:$0x3] %vm50_vm1, %v593_v14  ;;  %459 = vmatprep.subr.mxu1 %v593_v14  ;;  %v595_v16 = vmov 0   ;;  %v82_v25 = vld [vmem:[%s689_s1] sm:$0xff]  ;;  %vm93_vm3 = vcmask 64512   ;;  %v596_v29 = vmov 0.0|0.0  }
  0x29   :  { %475 = vmatprep.subr.mxu0 %v593_v14  ;;  %461 = vmatprep.mubr.msk.f32.mxu1 %vm594_vm2, %v593_v14  ;;  %vm257_vm4 = vcmask 253952   ;;  %v85_v50 = vld [vmem:[#allocation6 + $0x8] sm:$0xff]  ;;  %v86_v52 = vld [vmem:[#allocation6 + $0x10] sm:$0xff]  ;;  %v87_v53 = vld [vmem:[#allocation6 + $0x18] sm:$0xff]  ;;  %s597_s1 = smov [#allocation8]  }
  0x2a   :  { %477 = vmatprep.mubr.msk.f32.mxu0 %vm594_vm2, %v593_v14  ;;  %512 = vset.pattern.permute.xlu0 %v595_v16  ;;  %v492_v51 = vpack.c.bf16 %v85_v50, %v84_v49  ;;  %v495_v54 = vpack.c.bf16 %v87_v53, %v86_v52  ;;  %s426_s2 = sshll.u32 %s597_s1, 4  ;;  %s427_s2 = int_to_ptr.vmem [resolvable:$true] %s426_s2 }
  0x2b   :  { %s561_s17 = scalar_lea.vmem %s427_s2, 256  ;;  %p566_p3 = scmp.lt.s32.totalorder %s427_s2, %s427_s2 }
  0x2c   :  { %59 = vadd.xlane.f32.xlu0 %v58_v3  ;;  %p562_p2 = scmp.ne.s32.totalorder %s427_s2, %s561_s17  ;;  %p567_p4 = scmp.lt.s32.totalorder %s561_s17, %s561_s17 }
  0x2e   :  { %p568_p5 = por %p567_p4, %p566_p3 }
  0x2f   :  { %v248_v39 = vld [vmem:[#allocation2] sm:$0x1]  ;;  %v411_v45 = vld [vmem:[#allocation2 + $0x1] sm:$0x1] }
  0x30   :  { %v439_v42 = vld [vmem:[#allocation2] ss:$0 sm:$0xff]  ;;  %v442_v47 = vld [vmem:[#allocation2 + $0x1] ss:$0 sm:$0xff]  ;;  %p569_p6 = pnand %p568_p5, %p562_p2 }
  0x42   :  { %169 = vperm.xlu0 %512, %v83_v15  }
  0xb5   :  { %v57_v4 = vpop.xlane.xlu0 %56 }
  0xb6   :  { %v62_v5 = vmul.f32 0.03125, %v57_v4 }
  0xb8   :  { %v64_v6 = vsub.f32 %v52_v0, %v62_v5 }
  0xb9   :  { %v60_v7 = vpop.xlane.xlu0 %59 }
  0xba   :  { %v63_v8 = vmul.f32 0.03125, %v60_v7  ;;  %v66_v9 = vmul.f32 %v64_v6, %v64_v6 }
  0xbc   :  { %v65_v10 = vsub.f32 %v53_v1, %v63_v8  ;;  %v68_v11 = vsel %vm54_vm0, %v66_v9, 0.0 }
  0xbd   :  { %69 = vadd.xlane.f32.xlu1 %v68_v11 }
  0xbe   :  { %v67_v12 = vmul.f32 %v65_v10, %v65_v10 }
  0xc0   :  { %v71_v13 = vsel %vm54_vm0, %v67_v12, 0.0 }
  0xc1   :  { %72 = vadd.xlane.f32.xlu1 %v71_v13  ;;  %v170_v56 = vpop.permute.xlu0 %169 }
 0x14a   :  { %v70_v17 = vpop.xlane.xlu1 %69 }
 0x14b   :  { %v74_v18 = vmul.f32 0.03125, %v70_v17 }
 0x14d   :  { %v76_v19 = vadd.f32 1e-05, %v74_v18 }
 0x14e   :  { %v73_v20 = vpop.xlane.xlu1 %72 }
 0x14f   :  { %513 = vrsqrt.f32 %v76_v19  ;;  %v75_v21 = vmul.f32 0.03125, %v73_v20 }
 0x151   :  { %v77_v22 = vadd.f32 1e-05, %v75_v21 }
 0x153   :  { %515 = vrsqrt.f32 %v77_v22 }
 0x159   :  { %v514_v23 = vpop.eup %513 }
 0x15a   :  { %v80_v24 = vmul.f32 %v514_v23, %v64_v6 }
 0x15c   :  { %460 = vmatpush3.msra.mxu1 %v80_v24  ;;  %v249_v26 = vsel %vm54_vm0, %v80_v24, 0.0 }
 0x15d   :  { %v516_v27 = vpop.eup %515  ;;  %v250_v28 = vrot.slane %v249_v26, 4  ;;  %462 = vmatmul.mubr.msk.f32.vlgmr.msra.gmra.mrb[0].mxu1 %vm93_vm3, %v82_v25  ;;  %491 = vmatprep.subr.bf16.mxu1 %v596_v29 }
 0x15e   :  { %v81_v30 = vmul.f32 %v516_v27, %v65_v10  ;;  %472 = vmatprep.mubr.msk.f32.mxu1 %vm594_vm2, %v593_v14  ;;  %493 = vmatpush3.bf16.msra.mxu1 %v492_v51 }
 0x15f   :  { %v251_v31 = vadd.f32 %v250_v28, %v249_v26  ;;  %494 = vmatprep.subr.bf16.mxu1 %v596_v29 }
 0x160   :  { %476 = vmatpush3.msra.mxu0 %v81_v30  ;;  %v412_v32 = vsel %vm54_vm0, %v81_v30, 0.0 }
 0x161   :  { %v252_v33 = vrot.slane %v251_v31, 2  ;;  %v413_v34 = vrot.slane %v412_v32, 4  ;;  %478 = vmatmul.mubr.msk.f32.vlgmr.msra.gmra.mrb[0].mxu0 %vm93_vm3, %v82_v25  ;;  %497 = vmatprep.subr.bf16.mxu0 %v596_v29 }
 0x162   :  { %488 = vmatprep.mubr.msk.f32.mxu0 %vm594_vm2, %v593_v14  ;;  %499 = vmatpush3.bf16.msra.mxu0 %v492_v51 }
 0x163   :  { %v253_v35 = vadd.f32 %v252_v33, %v251_v31  ;;  %v414_v36 = vadd.f32 %v413_v34, %v412_v32  ;;  %500 = vmatprep.subr.bf16.mxu0 %v596_v29  ;;  %496 = vmatpush3.bf16.msra.mxu1 %v495_v54 }
 0x165   :  { %v254_v37 = vrot.slane %v253_v35, 1  ;;  %v415_v38 = vrot.slane %v414_v36, 2 }
 0x166   :  { %502 = vmatpush3.bf16.msra.mxu0 %v495_v54 }
 0x167   :  { %v255_v40 = vadd.f32 %v254_v37, %v253_v35  ;;  %v416_v41 = vadd.f32 %v415_v38, %v414_v36 }
 0x169   :  { %v256_v43 = vadd.f32 %v255_v40, %v248_v39  ;;  %v417_v44 = vrot.slane %v416_v41, 1 }
 0x16b   :  { %v418_v46 = vadd.f32 %v417_v44, %v416_v41  ;;  %258 = vst.msk [vmem:[#allocation2] sm:$0x1] %vm257_vm4, %v256_v43 }
 0x16d   :  { %v419_v48 = vadd.f32 %v418_v46, %v411_v45 }
 0x16f   :  { %420 = vst.msk [vmem:[#allocation2 + $0x1] sm:$0x1] %vm257_vm4, %v419_v48 }
 0x230   :  { %v163_v55 = vpop.f32.mrb[0].mxu1 }
 0x231   :  { %v164_v57 = vadd.f32 %v439_v42, %v163_v55  ;;  %v463_v58 = vpop.f32.mrb[1].mxu1 }
 0x233   :  { %v172_v59 = vmul.f32 %v170_v56, %v164_v57 }
 0x234   :  { %v330_v60 = vpop.f32.mrb[0].mxu0 }
 0x235   :  { %v173_v61 = vsub.f32 %v172_v59, %v80_v24  ;;  %v331_v62 = vadd.f32 %v442_v47, %v330_v60  ;;  %v479_v63 = vpop.f32.mrb[1].mxu0 }
 0x237   :  { %v334_v0 = vmul.f32 %v331_v62, %v170_v56  ;;  %473 = vmatmul.mubr.msk.f32.vlgmr.msra.gmra.mrb[2].mxu1 %vm54_vm0, %v173_v61 }
 0x239   :  { %v335_v1 = vsub.f32 %v334_v0, %v81_v30 }
 0x23b   :  { %489 = vmatmul.mubr.msk.f32.vlgmr.msra.gmra.mrb[2].mxu0 %vm54_vm0, %v335_v1 }
 0x30a   :  { %v243_v2 = vpop.f32.mrb[2].mxu1 }
 0x30b   :  { %247 = vst.msk [vmem:[#allocation8] sm:$0xff] %vm54_vm0, %v243_v2  ;;  %v474_v3 = vpop.f32.mrb[3].mxu1 }
 0x30e   :  { %v405_v4 = vpop.f32.mrb[2].mxu0 }
 0x30f   :  { %410 = vst.msk [vmem:[#allocation8 + $0x8] sm:$0xff] %vm54_vm0, %v405_v4  ;;  %v490_v5 = vpop.f32.mrb[3].mxu0 }
 0x310   :  { %572 = shalt.err (!%p569_p6)
}
 0x311   :  { %s573_s20 = scalar_lea.hbm %s692_s4, 256 }
 0x312   :  { %p574_p7 = scmp.ne.s32.totalorder %s692_s4, %s573_s20  ;;  %p577_p8 = scmp.lt.u32.totalorder %s573_s20, %s692_s4 }
 0x314   :  { %p579_p9 = pnand %p577_p8, %p574_p7 }
 0x316   :  { %582 = shalt.err (!%p579_p9)
}
 0x317   :  { %432 = dma.vmem_to_hbm [thread:$0]  %s427_s2, 256, %s692_s4, [#allocation5], %s590_s25, %s590_s25, %s591_s26  }
 0x318   :  { %587 = dma.done.wait [#allocation5], 256  }
 0x319   :  { %588 = vsyncadd [#allocation5], 4294967040 }
 0x31a   :  { %436 = vsyncpa [#allocation4], 1 }
 0x31b   :  { %437 = vsyncpa [#allocation7], 1 }
 0x31c   :  { %438 = vsyncpa [#allocation5], 1 }

</bundles_post_ra>
